<compile_context>
chip_gen: v7x
topology: tpu7x:2x2x1
jax: 0.10.0
libtpu: 0.0.40
codegen_flags: <defaults>
</compile_context>

<pallas_src>
import functools

import numpy as np
import jax
import jax.numpy as jnp
from jax.experimental import pallas as pl
from jax.experimental.pallas import tpu as pltpu

_LANES = 128


def _backproject_kernel(invk_ref, depth_ref, out_ref, *, width, rows_tile):
    # invk_ref:  (B, 16) f32 in SMEM     - flattened per-batch inv_K
    # depth_ref: (1, rows_tile, 128)     - depth tile (HW on sublane x lane)
    # out_ref:   (1, 4, rows_tile, 128)  - cam points tile (4 channel planes)
    b = pl.program_id(0)
    t = pl.program_id(1)

    # In-kernel pixel-coordinate generation (no pix_coords HBM traffic).
    row_ids = jax.lax.broadcasted_iota(jnp.int32, (rows_tile, _LANES), 0)
    lane_ids = jax.lax.broadcasted_iota(jnp.int32, (rows_tile, _LANES), 1)
    flat = ((t * rows_tile + row_ids) * _LANES + lane_ids).astype(jnp.float32)
    y = jnp.floor(flat / float(width))      # exact for HW < 2**24
    x = flat - y * float(width)

    d = depth_ref[0]                        # (rows_tile, 128) f32

    # 9 scalar-broadcast FMAs: (inv_K[:3,:3] @ [x; y; 1]) fused with depth scale.
    ik = lambda r, c: invk_ref[b, 4 * r + c]
    out_ref[0, 0] = d * (ik(0, 0) * x + ik(0, 1) * y + ik(0, 2))
    out_ref[0, 1] = d * (ik(1, 0) * x + ik(1, 1) * y + ik(1, 2))
    out_ref[0, 2] = d * (ik(2, 0) * x + ik(2, 1) * y + ik(2, 2))
    out_ref[0, 3] = jnp.ones_like(d)        # homogeneous row


def _pick_rows_tile(rows, target=256):
    """Largest divisor of `rows` that is a multiple of 8 and <= target (else rows)."""
    if rows <= target:
        return rows
    for t in range(target, 7, -1):
        if rows % t == 0 and t % 8 == 0:
            return t
    return rows  # fallback: single full-extent tile (still layout-legal)


def backproject_depth(depth, inv_K, batch_size, height, width):
    """depth: (B, 1, H, W) f32, inv_K: (B, 4, 4) f32 -> cam_points (B, 4, H*W) f32."""
    hw = height * width
    hw_pad = pl.cdiv(hw, _LANES) * _LANES
    rows = hw_pad // _LANES
    rows_tile = _pick_rows_tile(rows)

    depth_flat = depth.reshape(batch_size, hw).astype(jnp.float32)
    if hw_pad != hw:
        depth_flat = jnp.pad(depth_flat, ((0, 0), (0, hw_pad - hw)))
    depth_r = depth_flat.reshape(batch_size, rows, _LANES)       # HW on (sublane, lane)
    invk_flat = inv_K.astype(jnp.float32).reshape(batch_size, 16)

    kernel = functools.partial(_backproject_kernel, width=width, rows_tile=rows_tile)

    out = pl.pallas_call(
        kernel,
        out_shape=jax.ShapeDtypeStruct((batch_size, 4, rows, _LANES), jnp.float32),
        grid=(batch_size, rows // rows_tile),
        in_specs=[
            pl.BlockSpec(memory_space=pltpu.MemorySpace.SMEM),             # inv_K scalars
            pl.BlockSpec((1, rows_tile, _LANES), lambda b, t: (b, t, 0)),  # depth tile
        ],
        out_specs=pl.BlockSpec((1, 4, rows_tile, _LANES),
                               lambda b, t: (b, 0, t, 0)),
        compiler_params=pltpu.CompilerParams(
            dimension_semantics=("parallel", "parallel"),
            vmem_limit_bytes=32 * 1024 * 1024),
        cost_estimate=pl.CostEstimate(
            flops=18 * batch_size * hw_pad,
            transcendentals=0,
            bytes_accessed=batch_size * (hw_pad * 4 + 4 * hw_pad * 4 + 64)),
    )(invk_flat, depth_r)

    return out.reshape(batch_size, 4, hw_pad)[:, :, :hw]


def backproject_depth_ref(depth, inv_K, batch_size, height, width):
    """Pure-JAX reference mirroring the PyTorch forward (matmul with pix_coords)."""
    hw = height * width
    xs, ys = np.meshgrid(range(width), range(height), indexing="xy")
    pix = np.concatenate(
        [np.stack([xs.reshape(-1), ys.reshape(-1)], axis=0),
         np.ones((1, hw))], axis=0).astype(np.float32)           # (3, HW)
    pix_b = jnp.broadcast_to(jnp.asarray(pix), (batch_size, 3, hw))
    cam = jnp.einsum("bij,bjk->bik", inv_K[:, :3, :3], pix_b,
                     precision=jax.lax.Precision.HIGHEST)
    cam = depth.reshape(batch_size, 1, hw) * cam
    ones = jnp.ones((batch_size, 1, hw), jnp.float32)
    return jnp.concatenate([cam, ones], axis=1)


if __name__ == "__main__":
    B, H, W = 2, 8, 16          # small shapes; H*W = 128 (one lane-dense row)
    key = jax.random.PRNGKey(0)
    k_depth, k_invk = jax.random.split(key)

    depth = jax.random.uniform(k_depth, (B, 1, H, W), jnp.float32,
                               minval=0.1, maxval=10.0)

    # Deterministic plausible inv_K (inverse camera intrinsics), batch of 4x4.
    fx, fy, cx, cy = 0.58 * W, 1.92 * H, 0.5 * W, 0.5 * H
    K = np.array([[fx, 0.0, cx, 0.0],
                  [0.0, fy, cy, 0.0],
                  [0.0, 0.0, 1.0, 0.0],
                  [0.0, 0.0, 0.0, 1.0]], dtype=np.float32)
    inv_K_single = np.linalg.inv(K).astype(np.float32)
    inv_K = jnp.asarray(np.stack([inv_K_single] * B, axis=0))
    # small deterministic per-batch perturbation so batches differ
    inv_K = inv_K + 1e-3 * jax.random.normal(k_invk, (B, 4, 4), jnp.float32)

    out = backproject_depth(depth, inv_K, B, H, W)
    out = jax.block_until_ready(out)

    ref = backproject_depth_ref(depth, inv_K, B, H, W)
    assert out.shape == (B, 4, H * W)
    np.testing.assert_allclose(np.asarray(out), np.asarray(ref),
                               rtol=1e-5, atol=1e-5)
    print("KERNEL_OK")
</pallas_src>

<mosaic_0001>
module attributes {stable_mosaic.version = 11 : i64} {
  func.func @_backproject_kernel(%arg0: i32, %arg1: i32, %arg2: memref<2x16xf32, #tpu.memory_space<smem>>, %arg3: memref<1x1x128xf32, #tpu.memory_space<vmem>>, %arg4: memref<1x4x1x128xf32, #tpu.memory_space<vmem>>) attributes {dimension_semantics = [#tpu.dimension_semantics<parallel>, #tpu.dimension_semantics<parallel>], iteration_bounds = array<i64: 2, 1>, scalar_prefetch = 0 : i64, scratch_operands = 0 : i64, tpu.core_type = #tpu.core_type<tc>, window_params = [{transform_indices = @transform_0, window_bounds = array<i64: 2, 16>}, {transform_indices = @transform_1, window_bounds = array<i64: 1, 1, 128>}, {transform_indices = @transform_2, window_bounds = array<i64: 1, 4, 1, 128>}]} {
    %0 = tpu.iota {dimensions = array<i32: 0>} : vector<1x128xi32>
    %1 = tpu.iota {dimensions = array<i32: 1>} : vector<1x128xi32>
    %c1_i32 = arith.constant 1 : i32
    %2 = arith.muli %arg1, %c1_i32 : i32
    %3 = vector.broadcast %2 : i32 to vector<1x128xi32>
    %4 = arith.addi %3, %0 : vector<1x128xi32>
    %c128_i32 = arith.constant 128 : i32
    %5 = vector.broadcast %c128_i32 : i32 to vector<1x128xi32>
    %6 = arith.muli %4, %5 : vector<1x128xi32>
    %7 = arith.addi %6, %1 : vector<1x128xi32>
    %8 = arith.sitofp %7 : vector<1x128xi32> to vector<1x128xf32>
    %cst = arith.constant 1.600000e+01 : f32
    %9 = vector.broadcast %cst : f32 to vector<1x128xf32>
    %10 = arith.divf %8, %9 : vector<1x128xf32>
    %11 = math.floor %10 : vector<1x128xf32>
    %cst_0 = arith.constant 1.600000e+01 : f32
    %12 = vector.broadcast %cst_0 : f32 to vector<1x128xf32>
    %13 = arith.mulf %11, %12 : vector<1x128xf32>
    %14 = arith.subf %8, %13 : vector<1x128xf32>
    %c0 = arith.constant 0 : index
    %c0_1 = arith.constant 0 : index
    %c0_2 = arith.constant 0 : index
    %15 = vector.load %arg3[%c0, %c0_1, %c0_2] : memref<1x1x128xf32, #tpu.memory_space<vmem>>, vector<1x1x128xf32>
    %16 = vector.shape_cast %15 : vector<1x1x128xf32> to vector<1x128xf32>
    %17 = arith.index_cast %arg0 : i32 to index
    %c0_3 = arith.constant 0 : index
    %18 = memref.load %arg2[%17, %c0_3] : memref<2x16xf32, #tpu.memory_space<smem>>
    %19 = vector.broadcast %18 : f32 to vector<1x128xf32>
    %20 = arith.mulf %19, %14 : vector<1x128xf32>
    %21 = arith.index_cast %arg0 : i32 to index
    %c1 = arith.constant 1 : index
    %22 = memref.load %arg2[%21, %c1] : memref<2x16xf32, #tpu.memory_space<smem>>
    %23 = vector.broadcast %22 : f32 to vector<1x128xf32>
    %24 = arith.mulf %23, %11 : vector<1x128xf32>
    %25 = arith.addf %20, %24 : vector<1x128xf32>
    %26 = arith.index_cast %arg0 : i32 to index
    %c2 = arith.constant 2 : index
    %27 = memref.load %arg2[%26, %c2] : memref<2x16xf32, #tpu.memory_space<smem>>
    %28 = vector.broadcast %27 : f32 to vector<1x128xf32>
    %29 = arith.addf %25, %28 : vector<1x128xf32>
    %30 = arith.mulf %16, %29 : vector<1x128xf32>
    %c0_4 = arith.constant 0 : index
    %c0_5 = arith.constant 0 : index
    %c0_6 = arith.constant 0 : index
    %c0_7 = arith.constant 0 : index
    %31 = vector.load %arg4[%c0_4, %c0_5, %c0_6, %c0_7] : memref<1x4x1x128xf32, #tpu.memory_space<vmem>>, vector<1x1x1x128xf32>
    %32 = vector.shape_cast %31 : vector<1x1x1x128xf32> to vector<1x128xf32>
    %33 = vector.shape_cast %30 : vector<1x128xf32> to vector<1x1x1x128xf32>
    tpu.vector_store %arg4[%c0_4, %c0_5, %c0_6, %c0_7], %33 {strides = array<i32>} : memref<1x4x1x128xf32, #tpu.memory_space<vmem>>, vector<1x1x1x128xf32>,
    %34 = arith.index_cast %arg0 : i32 to index
    %c4 = arith.constant 4 : index
    %35 = memref.load %arg2[%34, %c4] : memref<2x16xf32, #tpu.memory_space<smem>>
    %36 = vector.broadcast %35 : f32 to vector<1x128xf32>
    %37 = arith.mulf %36, %14 : vector<1x128xf32>
    %38 = arith.index_cast %arg0 : i32 to index
    %c5 = arith.constant 5 : index
    %39 = memref.load %arg2[%38, %c5] : memref<2x16xf32, #tpu.memory_space<smem>>
    %40 = vector.broadcast %39 : f32 to vector<1x128xf32>
    %41 = arith.mulf %40, %11 : vector<1x128xf32>
    %42 = arith.addf %37, %41 : vector<1x128xf32>
    %43 = arith.index_cast %arg0 : i32 to index
    %c6 = arith.constant 6 : index
    %44 = memref.load %arg2[%43, %c6] : memref<2x16xf32, #tpu.memory_space<smem>>
    %45 = vector.broadcast %44 : f32 to vector<1x128xf32>
    %46 = arith.addf %42, %45 : vector<1x128xf32>
    %47 = arith.mulf %16, %46 : vector<1x128xf32>
    %c0_8 = arith.constant 0 : index
    %c1_9 = arith.constant 1 : index
    %c0_10 = arith.constant 0 : index
    %c0_11 = arith.constant 0 : index
    %48 = vector.load %arg4[%c0_8, %c1_9, %c0_10, %c0_11] : memref<1x4x1x128xf32, #tpu.memory_space<vmem>>, vector<1x1x1x128xf32>
    %49 = vector.shape_cast %48 : vector<1x1x1x128xf32> to vector<1x128xf32>
    %50 = vector.shape_cast %47 : vector<1x128xf32> to vector<1x1x1x128xf32>
    tpu.vector_store %arg4[%c0_8, %c1_9, %c0_10, %c0_11], %50 {strides = array<i32>} : memref<1x4x1x128xf32, #tpu.memory_space<vmem>>, vector<1x1x1x128xf32>,
    %51 = arith.index_cast %arg0 : i32 to index
    %c8 = arith.constant 8 : index
    %52 = memref.load %arg2[%51, %c8] : memref<2x16xf32, #tpu.memory_space<smem>>
    %53 = vector.broadcast %52 : f32 to vector<1x128xf32>
    %54 = arith.mulf %53, %14 : vector<1x128xf32>
    %55 = arith.index_cast %arg0 : i32 to index
    %c9 = arith.constant 9 : index
    %56 = memref.load %arg2[%55, %c9] : memref<2x16xf32, #tpu.memory_space<smem>>
    %57 = vector.broadcast %56 : f32 to vector<1x128xf32>
    %58 = arith.mulf %57, %11 : vector<1x128xf32>
    %59 = arith.addf %54, %58 : vector<1x128xf32>
    %60 = arith.index_cast %arg0 : i32 to index
    %c10 = arith.constant 10 : index
    %61 = memref.load %arg2[%60, %c10] : memref<2x16xf32, #tpu.memory_space<smem>>
    %62 = vector.broadcast %61 : f32 to vector<1x128xf32>
    %63 = arith.addf %59, %62 : vector<1x128xf32>
    %64 = arith.mulf %16, %63 : vector<1x128xf32>
    %c0_12 = arith.constant 0 : index
    %c2_13 = arith.constant 2 : index
    %c0_14 = arith.constant 0 : index
    %c0_15 = arith.constant 0 : index
    %65 = vector.load %arg4[%c0_12, %c2_13, %c0_14, %c0_15] : memref<1x4x1x128xf32, #tpu.memory_space<vmem>>, vector<1x1x1x128xf32>
    %66 = vector.shape_cast %65 : vector<1x1x1x128xf32> to vector<1x128xf32>
    %67 = vector.shape_cast %64 : vector<1x128xf32> to vector<1x1x1x128xf32>
    tpu.vector_store %arg4[%c0_12, %c2_13, %c0_14, %c0_15], %67 {strides = array<i32>} : memref<1x4x1x128xf32, #tpu.memory_space<vmem>>, vector<1x1x1x128xf32>,
    %cst_16 = arith.constant 1.000000e+00 : f32
    %68 = vector.broadcast %cst_16 : f32 to vector<1x128xf32>
    %c0_17 = arith.constant 0 : index
    %c3 = arith.constant 3 : index
    %c0_18 = arith.constant 0 : index
    %c0_19 = arith.constant 0 : index
    %69 = vector.load %arg4[%c0_17, %c3, %c0_18, %c0_19] : memref<1x4x1x128xf32, #tpu.memory_space<vmem>>, vector<1x1x1x128xf32>
    %70 = vector.shape_cast %69 : vector<1x1x1x128xf32> to vector<1x128xf32>
    %71 = vector.shape_cast %68 : vector<1x128xf32> to vector<1x1x1x128xf32>
    tpu.vector_store %arg4[%c0_17, %c3, %c0_18, %c0_19], %71 {strides = array<i32>} : memref<1x4x1x128xf32, #tpu.memory_space<vmem>>, vector<1x1x1x128xf32>,
    return
  }
  func.func @transform_0(%arg0: i32, %arg1: i32) -> (i32, i32) {
    %c0_i32 = arith.constant 0 : i32
    %c0_i32_0 = arith.constant 0 : i32
    %c0_i32_1 = arith.constant 0 : i32
    return %c0_i32, %c0_i32_0 : i32, i32
  }
  func.func @transform_1(%arg0: i32, %arg1: i32) -> (i32, i32, i32) {
    %c0_i32 = arith.constant 0 : i32
    %c0_i32_0 = arith.constant 0 : i32
    return %arg0, %arg1, %c0_i32 : i32, i32, i32
  }
  func.func @transform_2(%arg0: i32, %arg1: i32) -> (i32, i32, i32, i32) {
    %c0_i32 = arith.constant 0 : i32
    %c0_i32_0 = arith.constant 0 : i32
    %c0_i32_1 = arith.constant 0 : i32
    return %arg0, %c0_i32, %arg1, %c0_i32_0 : i32, i32, i32, i32
  }
}

</mosaic_0001>

<bundles_post_ra>
// kernel: tpu_custom_call.1
= control target key start
LH: loop header
LB: loop body
LE: loop exit
PB: predicated region body
PF: predicated region fallthrough
CT: control target
= control target key end

     0   :  { %7 = vsyncpa [#allocation4], 0  ;;  %s717_s0 = inlined_call_operand.hbm [shape: f32[2,16], index: 0, kind: input, shape index: {}]   ;;  %s718_s1 = inlined_call_operand.vmem [shape: f32[2,1,128], index: 1, kind: input, shape index: {}]   ;;  %s719_s2 = inlined_call_operand.hbm [shape: f32[2,4,1,128], index: 2, kind: output, shape index: {}]  }
   0x1   :  { %8 = vsyncpa [#allocation3], 0 }
   0x2   :  { %10 = vsyncpa [#allocation3 + $0x1], 0  ;;  %s540_s9 = smov 0   ;;  %s542_s10 = smov 0  }
   0x3   :  { %s544_s11 = smov 0   ;;  %s546_s12 = smov 0  }
   0x4   :  { %s548_s13 = smov 0   ;;  %s550_s14 = smov 0  }
   0x5 LB: > { %s336_s15 = sadd.s32 4294967295, %s518_s14   ;;  %s337_s16 = sadd.s32 4294967294, %s518_s14   ;;  %s518_s14 = sphi %s550_s14, %s16_s14   ;;  %s514_s13 = sphi %s548_s13, %s730_s13   ;;  %s510_s12 = sphi %s546_s12, %s729_s12   ;;  %s506_s11 = sphi %s544_s11, %s728_s11   ;;  %s502_s10 = sphi %s542_s10, %s727_s10   ;;  %s498_s9 = sphi %s540_s9, %s726_s9  }
   0x6   : > { %s28_s17 = sadd.s32 1, %s514_s13  ;;  %s86_s18 = sadd.s32 1, %s506_s11 }
   0x7   : > { %p30_p0 = scmp.ge.s32.totalorder %s28_s17, 2  ;;  %p96_p1 = scmp.ne.s32.totalorder %s506_s11, %s502_s10 }
   0x8   : > { %p97_p2 = scmp.eq.s32.totalorder %s336_s15, 1  ;;  %p102_p3 = scmp.ne.s32.totalorder %s502_s10, %s498_s9 }
   0x9   : > { %s732_s17 = smov (%p30_p0, %s28_s17), 0  ;;  %p103_p5 = scmp.eq.s32.totalorder %s337_s16, 1 }
   0xa   : > { %p580_p4 = por %p97_p2, %p96_p1  ;;  %s81_s20 = ssub.s32 %s514_s13, %s732_s17 }
   0xb   : > { %p338_p6 = scmp.ge.s32.totalorder %s518_s14, 1  ;;  %p84_p7 = scmp.eq.s32.totalorder %s81_s20, 0 }
   0xc   : > { %p587_p8 = por %p103_p5, %p102_p3  ;;  %p110_p9 = scmp.lt.s32.totalorder %s518_s14, 3 }
   0xd   : > { %s593_s22 = scalar_select %p84_p7, %s506_s11, %s86_s18  }
   0xe   : > { %p595_p10 = pnand %p338_p6, %p110_p9  ;;  %p599_p11 = scmp.eq.s32.totalorder %s336_s15, 0 }
   0xf   : > { %s423_s27 = scalar_lea.hbm %s717_s0, 32 }
  0x10   : > { %p360_p12 = pneg %p595_p10  ;;  %p424_p0 = scmp.ne.s32.totalorder %s717_s0, %s423_s27 }
  0x11   : > { %p430_p5 = scmp.lt.u32.totalorder %s423_s27, %s717_s0 }
  0x12   : > { %p361_p13 = pnand %p599_p11, %p360_p12 }
  0x14   : > { %p425_p1 = pneg %p361_p13 }
  0x16   : > { %p426_p2 = pnand %p425_p1, %p424_p0 }
  0x18   : > { %p427_p3 = pneg %p426_p2 }
  0x1a   : > { %p432_p6 = pnand %p430_p5, %p427_p3 }
  0x1c   : > { %435 = shalt.err (!%p432_p6)
}
  0x1d   : > { %s520_s4 = smov [#allocation2]   ;;  %143 = sbr.rel (%p595_p10) target bundleno = 81 (0x51), region = 28 }
  0x1e   : > { %363 = dma.hbm_to_smem (!%p361_p13), %s717_s0, 32, %s520_s4, [#allocation4]  }
  0x24   : > { %489 = dma.done.wait (%p599_p11), [#allocation4], 32  }
  0x25   : > { %491 = vsyncadd (%p599_p11), [#allocation4], 4294967264 }
  0x26   : > { %149 = sfence }
  0x27   : > { %s720_s7 = sand.u32 1, %s502_s10   ;;  %v173_v0 = vlaneseq  ;;  %s629_s15 = sshll.u32 %s510_s12, 7  ;;  %v521_v3 = vmov 1.0  }
  0x28   : > { %s343_s8 = sshll.u32 %s720_s7, 2  ;;  %p167_p7 = scmp.lt.s32.totalorder %s510_s12, 1 }
  0x29   : > { %v174_v1 = vshrl.u32 %v173_v0, 7  ;;  %v176_v2 = vand.u32 127, %v173_v0  ;;  %s632_s16 = scalar_lea.vmem [#allocation5], %s343_s8  ;;  %s192_s18 = sadd.s32 1, %s629_s15 }
  0x2a   : > { %347 = vst [vmem:[%s632_s16 + $0x3] sm:$0x1] %v521_v3  ;;  %s193_s20 = sld [smem:[#allocation2 + %s192_s18]]  ;;  %s197_s23 = sadd.s32 2, %s629_s15 }
  0x2b   : > { %v179_v4 = vmul.u32 128, %v174_v1  ;;  %s638_s24 = scalar_select %p167_p7, %s510_s12, 1 }
  0x2c   : > { %s189_s25 = sld [smem:[#allocation2 + %s629_s15]]  ;;  %s203_s26 = sadd.s32 4, %s629_s15 }
  0x2d   : > { %v180_v5 = vadd.s32 %v179_v4, %v176_v2  ;;  %s642_s27 = sld [smem:[#allocation2 + %s197_s23]]  ;;  %s207_s29 = sadd.s32 5, %s629_s15 }
  0x2e   : > { %s204_s28 = sld [smem:[#allocation2 + %s203_s26]]  ;;  %s212_s30 = sadd.s32 6, %s629_s15 }
  0x2f   : > { %v181_v6 = vcvt.s32.f32 %v180_v5  ;;  %s208_s3 = sld [smem:[#allocation2 + %s207_s29]]  ;;  %s219_s5 = sadd.s32 8, %s629_s15 }
  0x30   : > { %s646_s4 = sld [smem:[#allocation2 + %s212_s30]]  ;;  %s223_s6 = sadd.s32 9, %s629_s15  ;;  %v194_v9 = vstv %s193_s20 }
  0x31   : > { %v183_v7 = vmul.f32 0.0625, %v181_v6  ;;  %s220_s8 = sld [smem:[#allocation2 + %s219_s5]]  ;;  %s228_s7 = sadd.s32 10, %s629_s15 }
  0x32   : > { %s224_s18 = sld [smem:[#allocation2 + %s223_s6]]  ;;  %v190_v11 = vstv %s189_s25  ;;  %s172_s30 = scalar_lea.vmem %s718_s1, %s638_s24 }
  0x33   : > { %v184_v8 = vfloor.f32 %v183_v7  ;;  %s229_s23 = sld [smem:[#allocation2 + %s228_s7]]  ;;  %v199_v21 = vstv %s642_s27  ;;  %v187_v28 = vld [vmem:[%s172_s30] sm:$0x1]  ;;  %s252_s7 = sshll.u32 %s632_s16, 4  ;;  %s659_s7 = int_to_ptr.vmem [resolvable:$true] %s252_s7 }
  0x34   : > { %v205_v12 = vstv %s204_s28  ;;  %s353_s15 = sshll.u32 %s510_s12, 6  ;;  %s725_s12 = sand.u32 1, %s502_s10  }
  0x35   : > { %v185_v10 = vmul.f32 16.0, %v184_v8  ;;  %v195_v14 = vmul.f32 %v194_v9, %v184_v8  ;;  %v209_v15 = vstv %s208_s3  ;;  %s664_s25 = scalar_lea.hbm %s719_s2, %s353_s15  ;;  %s671_s27 = scalar_lea.sflag [#allocation3], %s725_s12 }
  0x36   : > { %v210_v16 = vmul.f32 %v209_v15, %v184_v8  ;;  %v214_v22 = vstv %s646_s4  ;;  %s436_s28 = scalar_lea.vmem %s659_s7, 64  ;;  %s522_s3 = smov [#allocation5]  }
  0x37   : > { %v186_v13 = vsub.f32 %v181_v6, %v185_v10  ;;  %v221_v19 = vstv %s220_s8  ;;  %p437_p9 = scmp.ne.s32.totalorder %s659_s7, %s436_s28  ;;  %s440_s4 = sshll.u32 %s522_s3, 4  ;;  %s441_s4 = int_to_ptr.vmem [resolvable:$false] %s440_s4 }
  0x38   : > { %v225_v20 = vstv %s224_s18  ;;  %s442_s5 = scalar_lea.vmem %s441_s4, 128  ;;  %p443_p12 = scmp.lt.s32.totalorder %s659_s7, %s441_s4 }
  0x39   : > { %v191_v17 = vmul.f32 %v190_v11, %v186_v13  ;;  %v206_v18 = vmul.f32 %v205_v12, %v186_v13  ;;  %v222_v23 = vmul.f32 %v221_v19, %v186_v13  ;;  %v226_v24 = vmul.f32 %v225_v20, %v184_v8  ;;  %p438_p10 = pnand %p437_p9, %p580_p4  ;;  %p444_p13 = scmp.lt.s32.totalorder %s442_s5, %s436_s28 }
  0x3a   : > { %v230_v27 = vstv %s229_s23 }
  0x3b   : > { %v196_v25 = vadd.f32 %v195_v14, %v191_v17  ;;  %v211_v26 = vadd.f32 %v210_v16, %v206_v18  ;;  %v227_v29 = vadd.f32 %v226_v24, %v222_v23  ;;  %p439_p11 = pneg %p438_p10  ;;  %p445_p0 = por %p444_p13, %p443_p12 }
  0x3d   : > { %v200_v30 = vadd.f32 %v199_v21, %v196_v25  ;;  %v215_v31 = vadd.f32 %v214_v22, %v211_v26  ;;  %v231_v32 = vadd.f32 %v230_v27, %v227_v29  ;;  %p446_p1 = pnand %p445_p0, %p439_p11 }
  0x3f   : > { %v201_v33 = vmul.f32 %v200_v30, %v187_v28  ;;  %v216_v34 = vmul.f32 %v215_v31, %v187_v28  ;;  %v232_v35 = vmul.f32 %v231_v32, %v187_v28 }
  0x41   : > { %202 = vst [vmem:[%s632_s16] sm:$0x1] %v201_v33  ;;  %345 = vst [vmem:[%s632_s16 + $0x1] sm:$0x1] %v216_v34 }
  0x42   : > { %346 = vst [vmem:[%s632_s16 + $0x2] sm:$0x1] %v232_v35 }
  0x43   : > { %449 = shalt.err (!%p446_p1)
}
  0x44   : > { %s450_s16 = scalar_lea.hbm %s664_s25, 64  ;;  %s454_s18 = scalar_lea.hbm %s719_s2, 128 }
  0x45   : > { %p451_p2 = scmp.ne.s32.totalorder %s664_s25, %s450_s16  ;;  %p455_p6 = scmp.lt.u32.totalorder %s664_s25, %s719_s2 }
  0x46   : > { %p456_p7 = scmp.lt.u32.totalorder %s454_s18, %s450_s16  ;;  %p458_p10 = scmp.lt.u32.totalorder %s450_s16, %s664_s25 }
  0x47   : > { %p452_p3 = pnand %p451_p2, %p580_p4 }
  0x48   : > { %p457_p9 = por %p456_p7, %p455_p6 }
  0x49   : > { %p453_p5 = pneg %p452_p3 }
  0x4a   : > { %p459_p11 = por %p458_p10, %p457_p9 }
  0x4c   : > { %p460_p12 = pnand %p459_p11, %p453_p5 }
  0x4e   : > { %463 = shalt.err (!%p460_p12)
}
  0x4f   : > { %s523_s29 = smov 16   ;;  %s524_s30 = smov 1  }
  0x50   : > { %358 = dma.vmem_to_hbm [thread:$0]  (%p580_p4), %s659_s7, 64, %s664_s25, %s671_s27, %s523_s29, %s523_s29, %s524_s30  }
  0x51 PF: > { %p370_p13 = scmp.ge.s32.totalorder %s518_s14, 2  ;;  %s267_s15 = sand.u32 1, %s498_s9  }
  0x52   : > { %s268_s20 = scalar_lea.sflag [#allocation3], %s267_s15 }
  0x53   : > { %p365_p0 = pnand %p370_p13, %p587_p8 }
  0x55   : > { %493 = dma.done.wait (!%p365_p0), %s268_s20, 64  }
  0x56   : > { %495 = vsyncadd (!%p365_p0), %s268_s20, 4294967232  ;;  %s16_s14 = sadd.s32 1, %s518_s14   ;;  %s726_s9 = smov %s502_s10 }
  0x57   : > { %p13_p1 = scmp.ge.s32.totalorder %s16_s14, 4   ;;  %s727_s10 = smov %s506_s11 }
  0x58   : > { %s728_s11 = smov %s593_s22  ;;  %s729_s12 = smov %s514_s13 }
  0x59   : > { %s730_s13 = smov %s732_s17  ;;  %15 = sbr.rel (!%p13_p1) target bundleno = 5 (0x5), region = 71 }
  0x60   :  { %273 = vsyncpa [#allocation3], 1 }
  0x61   :  { %275 = vsyncpa [#allocation3 + $0x1], 1 }
  0x62   :  { %276 = vsyncpa [#allocation4], 1 }
  0x63   :  { %278 = vsyncpa [#allocation4 + $0x1], 1 }

</bundles_post_ra>
